<compile_context>
chip_gen: v7x
topology: tpu7x:2x2x1
jax: 0.10.0
libtpu: 0.0.40
codegen_flags: <defaults>
</compile_context>

<pallas_src>
import functools
import math

import jax
import jax.numpy as jnp
import numpy as np
from jax import lax
from jax.experimental import pallas as pl
from jax.experimental.pallas import tpu as pltpu

BLOCK_SIZE = 100        # tril buffer size in the torch module (only [:T, :T] used)
EMBED_DIM = 30
HEAD_DIM = 16
BATCH = 2
SEQ = 8                 # T <= BLOCK_SIZE


def attention_head_kernel(x_ref, w_ref, bias_ref, o_ref, *, H):
    # x_ref: (B*T, C) flattened input
    # w_ref: (3H, C) fused [K; Q*1/sqrt(C); V] weights (nn.Linear layout, no transpose)
    # bias_ref: (B*T, B*T) additive mask (0 where kept, -1e30 where masked)
    x = x_ref[...]                                   # (B*T, C)
    w = w_ref[...]                                   # (3H, C)

    # Fused QKV projection: one MXU matmul contracting C, fp32 accumulate.
    qkv = lax.dot_general(
        x, w,
        dimension_numbers=(((1,), (1,)), ((), ())),
        preferred_element_type=jnp.float32,
    )                                                # (B*T, 3H)
    key = qkv[:, 0:H]
    query = qkv[:, H:2 * H]                          # already scaled by 1/sqrt(C)
    value = qkv[:, 2 * H:3 * H]

    # scores[i, j] = key_i . query_j  (matches torch: key @ query.transpose(-2,-1)),
    # scale already folded into the Q weight rows.
    scores = lax.dot_general(
        key, query,
        dimension_numbers=(((1,), (1,)), ((), ())),
        preferred_element_type=jnp.float32,
    )                                                # (B*T, B*T)

    # Precomputed block-diagonal (same batch) AND causal mask, additive form.
    scores = scores + bias_ref[...]

    # Softmax over last dim (diagonal always unmasked -> finite row max).
    m = jnp.max(scores, axis=-1, keepdims=True)
    e = jnp.exp(scores - m)
    denom = jnp.sum(e, axis=-1, keepdims=True)
    r = pl.reciprocal(denom, approx=True)            # EUP vrcp (free slot)
    r = r * (2.0 - denom * r)                        # one Newton step -> full f32 precision
    weights = e * r

    # logits = weights @ value  (cross-batch weights are exactly zero).
    o_ref[...] = jnp.dot(weights, value,
                         preferred_element_type=jnp.float32).astype(o_ref.dtype)


def fuse_qkv_weights(wk, wq, wv, embed_dim):
    """Build the fused (3H, C) weight ONCE, outside the hot path.

    Single axis-0 concat of the nn.Linear weights (no transposes); the
    1/sqrt(C) attention scale is folded into the query rows.
    """
    scale = 1.0 / math.sqrt(embed_dim)
    return jnp.concatenate([wk, wq * scale, wv], axis=0)        # (3H, C)


def make_mask_bias(B, T):
    """Precompute the additive block-diagonal + causal mask (0 / -1e30)."""
    bt = B * T
    row = np.arange(bt)[:, None]
    col = np.arange(bt)[None, :]
    keep = ((row // T) == (col // T)) & (col <= row)
    return jnp.asarray(np.where(keep, 0.0, -1e30).astype(np.float32))


def attention_head(x, w_qkv, mask_bias):
    """x: (B, T, C); w_qkv: (3H, C) from fuse_qkv_weights; mask_bias: (B*T, B*T)."""
    B, T, C = x.shape
    H = w_qkv.shape[0] // 3

    # Free XLA reshape: flatten batch so both batch elements share one MXU pass.
    x2d = x.reshape(B * T, C)

    out2d = pl.pallas_call(
        functools.partial(attention_head_kernel, H=H),
        out_shape=jax.ShapeDtypeStruct((B * T, H), jnp.float32),
        in_specs=[
            pl.BlockSpec(memory_space=pltpu.MemorySpace.VMEM),
            pl.BlockSpec(memory_space=pltpu.MemorySpace.VMEM),
            pl.BlockSpec(memory_space=pltpu.MemorySpace.VMEM),
        ],
        out_specs=pl.BlockSpec(memory_space=pltpu.MemorySpace.VMEM),
    )(x2d, w_qkv, mask_bias)

    return out2d.reshape(B, T, H)


def attention_head_ref(x, wk, wq, wv):
    # Pure-JAX reference mirroring the PyTorch forward exactly.
    B, T, C = x.shape
    key = x @ wk.T
    query = x @ wq.T
    value = x @ wv.T
    product = (key @ jnp.swapaxes(query, -2, -1)) / math.sqrt(C)
    row = jnp.arange(T)[:, None]
    col = jnp.arange(T)[None, :]
    product = jnp.where(col <= row, product, -jnp.inf)
    weights = jax.nn.softmax(product, axis=-1)
    return weights @ value


if __name__ == "__main__":
    key0 = jax.random.PRNGKey(0)
    kx, kk, kq, kv = jax.random.split(key0, 4)

    x = jax.random.normal(kx, (BATCH, SEQ, EMBED_DIM), dtype=jnp.float32)
    # nn.Linear(embed_dim, head_dim, bias=False) -> weight (head_dim, embed_dim)
    bound = 1.0 / math.sqrt(EMBED_DIM)
    wk = jax.random.uniform(kk, (HEAD_DIM, EMBED_DIM), jnp.float32, -bound, bound)
    wq = jax.random.uniform(kq, (HEAD_DIM, EMBED_DIM), jnp.float32, -bound, bound)
    wv = jax.random.uniform(kv, (HEAD_DIM, EMBED_DIM), jnp.float32, -bound, bound)

    # Built ONCE outside the per-call hot path (the "precompute fused weight" path).
    w_qkv = fuse_qkv_weights(wk, wq, wv, EMBED_DIM)        # (3H, C), scale folded in
    mask_bias = make_mask_bias(BATCH, SEQ)                 # (B*T, B*T) additive mask

    out = attention_head(x, w_qkv, mask_bias)
    out = jax.block_until_ready(out)

    ref = attention_head_ref(x, wk, wq, wv)
    assert out.shape == (BATCH, SEQ, HEAD_DIM)
    assert jnp.allclose(out, ref, atol=1e-5, rtol=1e-5)

    print("KERNEL_OK")
</pallas_src>

<mosaic_0001>
module attributes {stable_mosaic.version = 11 : i64} {
  func.func @attention_head_kernel(%arg0: memref<16x30xf32, #tpu.memory_space<vmem>>, %arg1: memref<48x30xf32, #tpu.memory_space<vmem>>, %arg2: memref<16x16xf32, #tpu.memory_space<vmem>>, %arg3: memref<16x16xf32, #tpu.memory_space<vmem>>) attributes {dimension_semantics = [], scalar_prefetch = 0 : i64, scratch_operands = 0 : i64, tpu.core_type = #tpu.core_type<tc>} {
    %c0 = arith.constant 0 : index
    %c0_0 = arith.constant 0 : index
    %0 = vector.load %arg0[%c0, %c0_0] : memref<16x30xf32, #tpu.memory_space<vmem>>, vector<16x30xf32>
    %c0_1 = arith.constant 0 : index
    %c0_2 = arith.constant 0 : index
    %1 = vector.load %arg1[%c0_1, %c0_2] : memref<48x30xf32, #tpu.memory_space<vmem>>, vector<48x30xf32>
    %cst = arith.constant dense<0.000000e+00> : vector<16x48xf32>
    %2 = tpu.matmul %0, %1, %cst {dimension_numbers = #tpu.dot_dimension_numbers<[1], [1], [0], [0], [0, 0, 1, 0], [], []>} : vector<16x30xf32>, vector<48x30xf32>, vector<16x48xf32> -> vector<16x48xf32>
    %3 = vector.extract_strided_slice %2 {offsets = [0, 0], sizes = [16, 16], strides = [1, 1]} : vector<16x48xf32> to vector<16x16xf32>
    %4 = vector.extract_strided_slice %2 {offsets = [0, 16], sizes = [16, 16], strides = [1, 1]} : vector<16x48xf32> to vector<16x16xf32>
    %5 = vector.extract_strided_slice %2 {offsets = [0, 32], sizes = [16, 16], strides = [1, 1]} : vector<16x48xf32> to vector<16x16xf32>
    %cst_3 = arith.constant dense<0.000000e+00> : vector<16x16xf32>
    %6 = tpu.matmul %3, %4, %cst_3 {dimension_numbers = #tpu.dot_dimension_numbers<[1], [1], [0], [0], [0, 0, 1, 0], [], []>} : vector<16x16xf32>, vector<16x16xf32>, vector<16x16xf32> -> vector<16x16xf32>
    %c0_4 = arith.constant 0 : index
    %c0_5 = arith.constant 0 : index
    %7 = vector.load %arg2[%c0_4, %c0_5] : memref<16x16xf32, #tpu.memory_space<vmem>>, vector<16x16xf32>
    %8 = arith.addf %6, %7 : vector<16x16xf32>
    %cst_6 = arith.constant dense<0xFF800000> : vector<16xf32>
    %9 = vector.multi_reduction <maximumf>, %8, %cst_6 [1] : vector<16x16xf32> to vector<16xf32>
    %10 = vector.shape_cast %9 : vector<16xf32> to vector<16x1xf32>
    %11 = vector.broadcast %10 : vector<16x1xf32> to vector<16x16xf32>
    %12 = arith.subf %8, %11 : vector<16x16xf32>
    %13 = math.exp %12 : vector<16x16xf32>
    %cst_7 = arith.constant dense<0.000000e+00> : vector<16xf32>
    %14 = vector.multi_reduction <add>, %13, %cst_7 [1] : vector<16x16xf32> to vector<16xf32>
    %15 = vector.shape_cast %14 : vector<16xf32> to vector<16x1xf32>
    %16 = tpu.reciprocal %15 {approx = true} : vector<16x1xf32> -> vector<16x1xf32>
    %17 = arith.mulf %15, %16 : vector<16x1xf32>
    %cst_8 = arith.constant 2.000000e+00 : f32
    %18 = vector.broadcast %cst_8 : f32 to vector<16x1xf32>
    %19 = arith.subf %18, %17 : vector<16x1xf32>
    %20 = arith.mulf %16, %19 : vector<16x1xf32>
    %21 = vector.broadcast %20 : vector<16x1xf32> to vector<16x16xf32>
    %22 = arith.mulf %13, %21 : vector<16x16xf32>
    %cst_9 = arith.constant dense<0.000000e+00> : vector<16x16xf32>
    %23 = tpu.matmul %22, %5, %cst_9 {dimension_numbers = #tpu.dot_dimension_numbers<[1], [0], [0], [1], [0, 0, 1, 1], [], []>} : vector<16x16xf32>, vector<16x16xf32>, vector<16x16xf32> -> vector<16x16xf32>
    %c0_10 = arith.constant 0 : index
    %c0_11 = arith.constant 0 : index
    %24 = vector.load %arg3[%c0_10, %c0_11] : memref<16x16xf32, #tpu.memory_space<vmem>>, vector<16x16xf32>
    tpu.vector_store %arg3[%c0_10, %c0_11], %23 {strides = array<i32>} : memref<16x16xf32, #tpu.memory_space<vmem>>, vector<16x16xf32>,
    return
  }
}

</mosaic_0001>

<bundles_post_ra>
// kernel: tpu_custom_call.1
= control target key start
LH: loop header
LB: loop body
LE: loop exit
PB: predicated region body
PF: predicated region fallthrough
CT: control target
= control target key end

     0   :  { %vm23_vm0 = vcmask 244736   ;;  %s565_s0 = inlined_call_operand.vmem [shape: f32[16,30], index: 0, kind: input, shape index: {}]   ;;  %s566_s1 = inlined_call_operand.vmem [shape: f32[48,30], index: 1, kind: input, shape index: {}]   ;;  %s567_s2 = inlined_call_operand.vmem [shape: f32[16,16], index: 2, kind: input, shape index: {}]   ;;  %s568_s3 = inlined_call_operand.hbm [shape: f32[16,16], index: 3, kind: output, shape index: {}]  }
   0x1   :  { %v17_v0 = vld [vmem:[%s566_s1] sm:$0xff]  ;;  %v18_v1 = vld [vmem:[%s566_s1 + $0x8] sm:$0xff]  ;;  %v19_v2 = vld [vmem:[%s566_s1 + $0x10] sm:$0xff] }
   0x2   :  { %v407_v3 = vpack.c.bf16 %v18_v1, %v17_v0  ;;  %vm408_vm1 = vmpackc.low %vm23_vm0, %vm23_vm0  ;;  %v20_v4 = vld [vmem:[%s566_s1 + $0x18] sm:$0xff]  ;;  %v15_v6 = vld [vmem:[%s565_s0] sm:$0xff] }
   0x3   :  { %v413_v5 = vpack.c.bf16 %v20_v4, %v19_v2  ;;  %390 = vmatprep.mubr.msk.f32.mxu0 %vm23_vm0, %v15_v6 }
   0x4   :  { %409 = vmatprep.subr.msk.bf16.mxu0 %vm408_vm1, %v407_v3 }
   0x5   :  { %8 = vsyncpa [#allocation3], 0  ;;  %412 = vmatpush3.bf16.xpose.msk.msra.mxu0 %vm408_vm1, %v407_v3  ;;  %v21_v7 = vld [vmem:[%s566_s1 + $0x20] sm:$0xff]  ;;  %v22_v8 = vld [vmem:[%s566_s1 + $0x28] sm:$0xff]  ;;  %vm131_vm2 = vcmask 130048   ;;  %s482_s28 = smov 112  }
   0x6   :  { %415 = vmatprep.subr.msk.bf16.mxu0 %vm408_vm1, %v413_v5  ;;  %v419_v9 = vpack.c.bf16 %v22_v8, %v21_v7  ;;  %v16_v10 = vld [vmem:[%s565_s0 + $0x8] sm:$0xff]  ;;  %vm426_vm3 = vmpackc.low %vm131_vm2, %vm131_vm2  ;;  %v123_v19 = vld [vmem:[%s567_s2] sm:$0xff]  ;;  %s484_s4 = smov [#allocation2]  }
   0x7   :  { %v124_v18 = vld [vmem:[%s567_s2 + $0x8] sm:$0xff]  ;;  %s483_s2 = smov 96   ;;  %s337_s5 = sshll.u32 %s484_s4, 4  ;;  %s338_s5 = int_to_ptr.vmem [resolvable:$true] %s337_s5 }
   0x8   :  { %s458_s6 = scalar_lea.vmem %s338_s5, 256  ;;  %p463_p1 = scmp.lt.s32.totalorder %s338_s5, %s338_s5 }
   0x9   :  { %p459_p0 = scmp.ne.s32.totalorder %s338_s5, %s458_s6  ;;  %p464_p2 = scmp.lt.s32.totalorder %s458_s6, %s458_s6 }
   0xb   :  { %p465_p3 = por %p464_p2, %p463_p1 }
   0xd   :  { %418 = vmatpush3.bf16.xpose.msk.msra.mxu0 %vm408_vm1, %v413_v5  ;;  %p466_p4 = pnand %p465_p3, %p459_p0 }
   0xe   :  { %421 = vmatprep.subr.msk.bf16.mxu0 %vm408_vm1, %v419_v9 }
  0x15   :  { %424 = vmatpush3.bf16.xpose.msk.msra.mxu0 %vm408_vm1, %v419_v9 }
  0x1c   :  { %391 = vmatmul.mubr.msk.f32.vlgmr.msra.gmra.mrb[0].mxu0 %vm23_vm0, %v16_v10 }
  0xef   :  { %v392_v11 = vpop.f32.mrb[0].mxu0 }
  0xf0   :  { %v114_v12 = vpop.f32.mrb[1].mxu0 }
  0xf1   :  { %v445_v13 = vpack.i.bf16 %v392_v11, %v114_v12  ;;  %397 = vmatprep.mubr.msk.f32.mxu1 %vm131_vm2, %v114_v12 }
  0xf3   :  { %441 = vrot.lane.b32.xlu0 %v445_v13, %s482_s28 }
 0x165   :  { %v442_v14 = vpop.permute.xlu0 %441 }
 0x166   :  { %v444_v15 = vunpack.i.h.bf16 %v442_v14  ;;  %v443_v16 = vunpack.i.l.bf16 %v442_v14 }
 0x168   :  { %v425_v17 = vpack.c.bf16 %v444_v15, %v443_v16 }
 0x16a   :  { %427 = vmatprep.subr.msk.bf16.mxu1 %vm426_vm3, %v425_v17 }
 0x16b   :  { %430 = vmatpush3.bf16.xpose.msk.msra.mxu1 %vm426_vm3, %v425_v17 }
 0x172   :  { %398 = vmatmul.mubr.msk.f32.vlgmr.msra.gmra.mrb[0].mxu1 %vm131_vm2, %v392_v11 }
 0x245   :  { %v399_v20 = vpop.f32.mrb[0].mxu1 }
 0x246   :  { %v212_v21 = vadd.f32 %v399_v20, %v124_v18  ;;  %v206_v22 = vpop.f32.mrb[1].mxu1 }
 0x247   :  { %v207_v23 = vadd.f32 %v206_v22, %v123_v19 }
 0x248   :  { %v218_v24 = vsel %vm131_vm2, %v212_v21, -inf }
 0x249   :  { %219 = vmax.xlane.f32.xlu1 %v218_v24  ;;  %v215_v25 = vsel %vm131_vm2, %v207_v23, -inf }
 0x24a   :  { %216 = vmax.xlane.f32.xlu0 %v215_v25 }
 0x2d6   :  { %v220_v26 = vpop.xlane.xlu1 %219 }
 0x2d7   :  { %v222_v27 = vsub.f32 %v212_v21, %v220_v26  ;;  %v217_v28 = vpop.xlane.xlu0 %216 }
 0x2d8   :  { %v221_v29 = vsub.f32 %v207_v23, %v217_v28 }
 0x2d9   :  { %v225_v30 = vmul.f32 1.442695, %v222_v27 }
 0x2da   :  { %v223_v31 = vmul.f32 1.442695, %v221_v29 }
 0x2db   :  { %450 = vpow2.f32 %v225_v30 }
 0x2dc   :  { %452 = vpow2.f32 %v223_v31 }
 0x2e5   :  { %v451_v32 = vpop.eup %450 }
 0x2e6   :  { %v230_v33 = vsel %vm131_vm2, %v451_v32, 0.0  ;;  %v453_v34 = vpop.eup %452 }
 0x2e7   :  { %231 = vadd.xlane.f32.xlu1 %v230_v33  ;;  %v227_v35 = vsel %vm131_vm2, %v453_v34, 0.0 }
 0x2eb   :  { %228 = vadd.xlane.f32.xlu1 %v227_v35 }
 0x2fc   :  { %446 = vrot.lane.b32.xlu1 %v445_v13, %s483_s2 }
 0x374   :  { %v232_v36 = vpop.xlane.xlu1 %231 }
 0x375   :  { %454 = vrcp.f32 %v232_v36 }
 0x378   :  { %v229_v37 = vpop.xlane.xlu1 %228 }
 0x379   :  { %456 = vrcp.f32 %v229_v37 }
 0x37c   :  { %v447_v38 = vpop.permute.xlu1 %446 }
 0x37d   :  { %v449_v39 = vunpack.i.h.bf16 %v447_v38  ;;  %v448_v40 = vunpack.i.l.bf16 %v447_v38 }
 0x37f   :  { %v455_v41 = vpop.eup %454  ;;  %v431_v42 = vpack.c.bf16 %v449_v39, %v448_v40 }
 0x380   :  { %v236_v43 = vmul.f32 %v455_v41, %v232_v36 }
 0x381   :  { %432 = vmatprep.subr.bf16.mxu1 %v431_v42 }
 0x382   :  { %434 = vmatpush3.bf16.msra.mxu1 %v431_v42  ;;  %v238_v45 = vsub.f32 2.0, %v236_v43 }
 0x383   :  { %v457_v44 = vpop.eup %456 }
 0x384   :  { %v235_v46 = vmul.f32 %v457_v44, %v229_v37  ;;  %v240_v48 = vmul.f32 %v455_v41, %v238_v45 }
 0x386   :  { %v237_v47 = vsub.f32 2.0, %v235_v46  ;;  %v242_v51 = vmul.f32 %v451_v32, %v240_v48 }
 0x388   :  { %v239_v49 = vmul.f32 %v457_v44, %v237_v47 }
 0x38a   :  { %v241_v50 = vmul.f32 %v453_v34, %v239_v49 }
 0x38c   :  { %404 = vmatprep.mubr.msk.f32.mxu1 %vm131_vm2, %v241_v50 }
 0x38d   :  { %405 = vmatmul.mubr.msk.f32.vlgmr.msra.gmra.mrb[2].mxu1 %vm131_vm2, %v242_v51 }
 0x460   :  { %v406_v52 = vpop.f32.mrb[2].mxu1 }
 0x461   :  { %331 = vst.msk [vmem:[#allocation2 + $0x8] sm:$0xff] %vm131_vm2, %v406_v52  ;;  %v321_v53 = vpop.f32.mrb[3].mxu1 }
 0x462   :  { %330 = vst.msk [vmem:[#allocation2] sm:$0xff] %vm131_vm2, %v321_v53 }
 0x463   :  { %469 = shalt.err (!%p466_p4)
}
 0x464   :  { %s470_s9 = scalar_lea.hbm %s568_s3, 256 }
 0x465   :  { %p471_p5 = scmp.ne.s32.totalorder %s568_s3, %s470_s9  ;;  %p474_p6 = scmp.lt.u32.totalorder %s470_s9, %s568_s3 }
 0x467   :  { %p476_p7 = pnand %p474_p6, %p471_p5 }
 0x469   :  { %479 = shalt.err (!%p476_p7)
}
 0x46a   :  { %s485_s14 = smov 128   ;;  %s486_s15 = smov 8  }
 0x46b   :  { %343 = dma.vmem_to_hbm [thread:$0]  %s338_s5, 256, %s568_s3, [#allocation3], %s485_s14, %s485_s14, %s486_s15  }
 0x46c   :  { %480 = dma.done.wait [#allocation3], 256  }
 0x46d   :  { %481 = vsyncadd [#allocation3], 4294967040 }
 0x46e   :  { %347 = vsyncpa [#allocation3], 1 }

</bundles_post_ra>
